<compile_context>
chip_gen: v7x
topology: tpu7x:2x2x1
jax: 0.10.0
libtpu: 0.0.40
codegen_flags: <defaults>
</compile_context>

<pallas_src>
import jax
import jax.numpy as jnp
from jax.experimental import pallas as pl
from jax.experimental.pallas import tpu as pltpu


N_INPUT = 15          # number of features fed to the MLP
HIDDEN1 = 256
HIDDEN2 = 128


def _round_up(x, m):
    return (x + m - 1) // m * m


def _make_kernel(n_other):
    """Kernel closure: fused slice -> 3x(Linear+ReLU) -> concat -> store."""

    def kernel(obs_ref, w1_ref, b1_ref, w2_ref, b2_ref, w3_ref, b3_ref, o_ref):
        obs = obs_ref[...]                                # [Bt, obs_dim] f32

        # MLP on the first 15 features.  Matmul operands use the weights'
        # dtype (f32 or bf16) with f32 MXU accumulation; bias add + ReLU stay
        # in f32 (v5e has no bf16 VPU path).
        x = obs[:, :N_INPUT].astype(w1_ref.dtype)
        h = jnp.dot(x, w1_ref[...], preferred_element_type=jnp.float32)
        h = jnp.maximum(h + b1_ref[...], 0.0)

        h = jnp.dot(h.astype(w2_ref.dtype), w2_ref[...],
                    preferred_element_type=jnp.float32)
        h = jnp.maximum(h + b2_ref[...], 0.0)

        h = jnp.dot(h.astype(w3_ref.dtype), w3_ref[...],
                    preferred_element_type=jnp.float32)
        h = jnp.maximum(h + b3_ref[...], 0.0)
        h = h.astype(o_ref.dtype)

        if n_other > 0:
            # Fused concat with the pass-through features: single full-tile
            # store instead of a separate XLA slice + concat pass over HBM.
            o_ref[...] = jnp.concatenate(
                [h, obs[:, N_INPUT:].astype(o_ref.dtype)], axis=1)
        else:
            o_ref[...] = h

    return kernel


def environment_factor_encoder(observations, params, processed_dim=8, *,
                               b_tile_max=512):
    """observations: [B, obs_dim] float32, obs_dim >= 15.

    params: dict with w1:[15,256], w2:[256,128], w3:[128,processed_dim]
            (f32 or bf16, stored as [in, out]) and f32 biases b1:[1,256],
            b2:[1,128], b3:[1,processed_dim].
    Returns: [B, processed_dim + (obs_dim - 15)] float32
    """
    B, obs_dim = observations.shape
    assert obs_dim >= N_INPUT
    n_other = obs_dim - N_INPUT
    out_dim = processed_dim + n_other

    # Batch tile: multiple of 8 (f32 sublane); cap at 512 (multiple of 256 to
    # fill the 2x256x256 MXU on v6e/v7x, multiple of 128 for v5e).
    b_tile = min(b_tile_max, _round_up(B, 8))
    b_tile = _round_up(b_tile, 8)
    B_pad = _round_up(B, b_tile)

    obs = observations
    if B_pad != B:
        obs = jnp.pad(observations, ((0, B_pad - B), (0, 0)))

    grid = (B_pad // b_tile,)

    in_specs = [
        pl.BlockSpec((b_tile, obs_dim), lambda i: (i, 0)),       # observations
        pl.BlockSpec((N_INPUT, HIDDEN1), lambda i: (0, 0)),      # w1 (resident)
        pl.BlockSpec((1, HIDDEN1), lambda i: (0, 0)),            # b1
        pl.BlockSpec((HIDDEN1, HIDDEN2), lambda i: (0, 0)),      # w2
        pl.BlockSpec((1, HIDDEN2), lambda i: (0, 0)),            # b2
        pl.BlockSpec((HIDDEN2, processed_dim), lambda i: (0, 0)),  # w3
        pl.BlockSpec((1, processed_dim), lambda i: (0, 0)),      # b3
    ]
    out_specs = pl.BlockSpec((b_tile, out_dim), lambda i: (i, 0))

    param_bytes = sum(int(p.size) * p.dtype.itemsize for p in params.values())
    cost = pl.CostEstimate(
        flops=2 * B_pad * (N_INPUT * HIDDEN1 + HIDDEN1 * HIDDEN2
                           + HIDDEN2 * processed_dim),
        transcendentals=0,
        bytes_accessed=(B_pad * obs_dim * 4 + param_bytes + B_pad * out_dim * 4),
    )

    out = pl.pallas_call(
        _make_kernel(n_other),
        out_shape=jax.ShapeDtypeStruct((B_pad, out_dim), jnp.float32),
        grid=grid,
        in_specs=in_specs,
        out_specs=out_specs,
        compiler_params=pltpu.CompilerParams(
            # Batch tiles are independent: lets v7x shard them over its 2 TCs.
            dimension_semantics=("parallel",),
        ),
        cost_estimate=cost,
    )(obs, params["w1"], params["b1"], params["w2"], params["b2"],
      params["w3"], params["b3"])

    if B_pad != B:
        out = out[:B]
    return out


def init_params(key, processed_dim=8, weight_dtype=jnp.float32):
    """Deterministic synthetic parameters (uniform, PyTorch-Linear fan-in scale).

    Weights stored as [in, out] in `weight_dtype`; biases kept in f32."""
    ks = jax.random.split(key, 6)

    def lin(kw, kb, fan_in, fan_out):
        bound = 1.0 / jnp.sqrt(fan_in)
        w = jax.random.uniform(kw, (fan_in, fan_out), jnp.float32, -bound, bound)
        b = jax.random.uniform(kb, (1, fan_out), jnp.float32, -bound, bound)
        return w.astype(weight_dtype), b

    w1, b1 = lin(ks[0], ks[1], N_INPUT, HIDDEN1)
    w2, b2 = lin(ks[2], ks[3], HIDDEN1, HIDDEN2)
    w3, b3 = lin(ks[4], ks[5], HIDDEN2, processed_dim)
    return {"w1": w1, "b1": b1, "w2": w2, "b2": b2, "w3": w3, "b3": b3}


def _reference(observations, params):
    """Pure-JAX f32 reference for correctness sanity checks."""
    x = observations[:, :N_INPUT]
    other = observations[:, N_INPUT:]
    w1 = params["w1"].astype(jnp.float32)
    w2 = params["w2"].astype(jnp.float32)
    w3 = params["w3"].astype(jnp.float32)
    h = jnp.maximum(x @ w1 + params["b1"], 0.0)
    h = jnp.maximum(h @ w2 + params["b2"], 0.0)
    h = jnp.maximum(h @ w3 + params["b3"], 0.0)
    return jnp.concatenate([h, other], axis=1)


if __name__ == "__main__":
    key = jax.random.PRNGKey(0)
    k_obs, k_par = jax.random.split(key)

    batch = 8
    other_dim = 5                     # observation_space.shape[0] = 15 + 5 = 20
    obs_dim = N_INPUT + other_dim
    processed_dim = 8

    observations = jax.random.normal(k_obs, (batch, obs_dim), jnp.float32)

    # 1) f32 weights — exact match to the PyTorch forward semantics.
    params_f32 = init_params(k_par, processed_dim, jnp.float32)
    out = jax.block_until_ready(
        environment_factor_encoder(observations, params_f32, processed_dim))
    ref = _reference(observations, params_f32)
    assert out.shape == (batch, processed_dim + other_dim), out.shape
    assert jnp.allclose(out, ref, atol=1e-5, rtol=1e-5), "f32 mismatch vs reference"

    # 2) bf16 weights (v6e/v7x MXU-native path), f32 accumulation + elementwise.
    params_bf16 = init_params(k_par, processed_dim, jnp.bfloat16)
    out_bf16 = jax.block_until_ready(
        environment_factor_encoder(observations, params_bf16, processed_dim))
    assert jnp.allclose(out_bf16, ref, atol=5e-2, rtol=5e-2), "bf16 mismatch vs reference"

    # 3) Batch that needs padding and multiple grid steps (exercises the
    #    tiled/parallel grid + remainder handling).
    obs2 = jax.random.normal(jax.random.PRNGKey(1), (50, obs_dim), jnp.float32)
    out2 = jax.block_until_ready(
        environment_factor_encoder(obs2, params_f32, processed_dim, b_tile_max=16))
    ref2 = _reference(obs2, params_f32)
    assert out2.shape == (50, processed_dim + other_dim), out2.shape
    assert jnp.allclose(out2, ref2, atol=1e-5, rtol=1e-5), "tiled mismatch vs reference"

    print("KERNEL_OK")
</pallas_src>

<mosaic_0001>
module attributes {stable_mosaic.version = 11 : i64} {
  func.func @kernel(%arg0: i32, %arg1: memref<8x20xf32, #tpu.memory_space<vmem>>, %arg2: memref<15x256xf32, #tpu.memory_space<vmem>>, %arg3: memref<1x256xf32, #tpu.memory_space<vmem>>, %arg4: memref<256x128xf32, #tpu.memory_space<vmem>>, %arg5: memref<1x128xf32, #tpu.memory_space<vmem>>, %arg6: memref<128x8xf32, #tpu.memory_space<vmem>>, %arg7: memref<1x8xf32, #tpu.memory_space<vmem>>, %arg8: memref<8x13xf32, #tpu.memory_space<vmem>>) attributes {dimension_semantics = [#tpu.dimension_semantics<parallel>], iteration_bounds = array<i64: 1>, scalar_prefetch = 0 : i64, scratch_operands = 0 : i64, tpu.core_type = #tpu.core_type<tc>, window_params = [{transform_indices = @transform_0, window_bounds = array<i64: 8, 20>}, {pipeline_mode = #tpu.pipeline_mode<synchronous>, transform_indices = @transform_1, window_bounds = array<i64: 15, 256>}, {pipeline_mode = #tpu.pipeline_mode<synchronous>, transform_indices = @transform_2, window_bounds = array<i64: 1, 256>}, {pipeline_mode = #tpu.pipeline_mode<synchronous>, transform_indices = @transform_3, window_bounds = array<i64: 256, 128>}, {pipeline_mode = #tpu.pipeline_mode<synchronous>, transform_indices = @transform_4, window_bounds = array<i64: 1, 128>}, {pipeline_mode = #tpu.pipeline_mode<synchronous>, transform_indices = @transform_5, window_bounds = array<i64: 128, 8>}, {pipeline_mode = #tpu.pipeline_mode<synchronous>, transform_indices = @transform_6, window_bounds = array<i64: 1, 8>}, {transform_indices = @transform_7, window_bounds = array<i64: 8, 13>}]} {
    %c0 = arith.constant 0 : index
    %c0_0 = arith.constant 0 : index
    %0 = vector.load %arg1[%c0, %c0_0] : memref<8x20xf32, #tpu.memory_space<vmem>>, vector<8x20xf32>
    %1 = vector.extract_strided_slice %0 {offsets = [0, 0], sizes = [8, 15], strides = [1, 1]} : vector<8x20xf32> to vector<8x15xf32>
    %c0_1 = arith.constant 0 : index
    %c0_2 = arith.constant 0 : index
    %2 = vector.load %arg2[%c0_1, %c0_2] : memref<15x256xf32, #tpu.memory_space<vmem>>, vector<15x256xf32>
    %cst = arith.constant dense<0.000000e+00> : vector<8x256xf32>
    %3 = tpu.matmul %1, %2, %cst {dimension_numbers = #tpu.dot_dimension_numbers<[1], [0], [0], [1], [0, 0, 1, 1], [], []>} : vector<8x15xf32>, vector<15x256xf32>, vector<8x256xf32> -> vector<8x256xf32>
    %c0_3 = arith.constant 0 : index
    %c0_4 = arith.constant 0 : index
    %4 = vector.load %arg3[%c0_3, %c0_4] : memref<1x256xf32, #tpu.memory_space<vmem>>, vector<1x256xf32>
    %5 = vector.broadcast %4 : vector<1x256xf32> to vector<8x256xf32>
    %6 = arith.addf %3, %5 : vector<8x256xf32>
    %cst_5 = arith.constant 0.000000e+00 : f32
    %7 = vector.broadcast %cst_5 : f32 to vector<8x256xf32>
    %8 = arith.maximumf %6, %7 : vector<8x256xf32>
    %c0_6 = arith.constant 0 : index
    %c0_7 = arith.constant 0 : index
    %9 = vector.load %arg4[%c0_6, %c0_7] : memref<256x128xf32, #tpu.memory_space<vmem>>, vector<256x128xf32>
    %cst_8 = arith.constant dense<0.000000e+00> : vector<8x128xf32>
    %10 = tpu.matmul %8, %9, %cst_8 {dimension_numbers = #tpu.dot_dimension_numbers<[1], [0], [0], [1], [0, 0, 1, 1], [], []>} : vector<8x256xf32>, vector<256x128xf32>, vector<8x128xf32> -> vector<8x128xf32>
    %c0_9 = arith.constant 0 : index
    %c0_10 = arith.constant 0 : index
    %11 = vector.load %arg5[%c0_9, %c0_10] : memref<1x128xf32, #tpu.memory_space<vmem>>, vector<1x128xf32>
    %12 = vector.broadcast %11 : vector<1x128xf32> to vector<8x128xf32>
    %13 = arith.addf %10, %12 : vector<8x128xf32>
    %cst_11 = arith.constant 0.000000e+00 : f32
    %14 = vector.broadcast %cst_11 : f32 to vector<8x128xf32>
    %15 = arith.maximumf %13, %14 : vector<8x128xf32>
    %c0_12 = arith.constant 0 : index
    %c0_13 = arith.constant 0 : index
    %16 = vector.load %arg6[%c0_12, %c0_13] : memref<128x8xf32, #tpu.memory_space<vmem>>, vector<128x8xf32>
    %cst_14 = arith.constant dense<0.000000e+00> : vector<8x8xf32>
    %17 = tpu.matmul %15, %16, %cst_14 {dimension_numbers = #tpu.dot_dimension_numbers<[1], [0], [0], [1], [0, 0, 1, 1], [], []>} : vector<8x128xf32>, vector<128x8xf32>, vector<8x8xf32> -> vector<8x8xf32>
    %c0_15 = arith.constant 0 : index
    %c0_16 = arith.constant 0 : index
    %18 = vector.load %arg7[%c0_15, %c0_16] : memref<1x8xf32, #tpu.memory_space<vmem>>, vector<1x8xf32>
    %19 = vector.broadcast %18 : vector<1x8xf32> to vector<8x8xf32>
    %20 = arith.addf %17, %19 : vector<8x8xf32>
    %cst_17 = arith.constant 0.000000e+00 : f32
    %21 = vector.broadcast %cst_17 : f32 to vector<8x8xf32>
    %22 = arith.maximumf %20, %21 : vector<8x8xf32>
    %23 = vector.extract_strided_slice %0 {offsets = [0, 15], sizes = [8, 5], strides = [1, 1]} : vector<8x20xf32> to vector<8x5xf32>
    %24 = tpu.concatenate %22, %23 in 1 : vector<8x8xf32>, vector<8x5xf32> -> vector<8x13xf32>
    %c0_18 = arith.constant 0 : index
    %c0_19 = arith.constant 0 : index
    %25 = vector.load %arg8[%c0_18, %c0_19] : memref<8x13xf32, #tpu.memory_space<vmem>>, vector<8x13xf32>
    tpu.vector_store %arg8[%c0_18, %c0_19], %24 {strides = array<i32>} : memref<8x13xf32, #tpu.memory_space<vmem>>, vector<8x13xf32>,
    return
  }
  func.func @transform_0(%arg0: i32) -> (i32, i32) {
    %c0_i32 = arith.constant 0 : i32
    %c0_i32_0 = arith.constant 0 : i32
    return %arg0, %c0_i32 : i32, i32
  }
  func.func @transform_1(%arg0: i32) -> (i32, i32) {
    %c0_i32 = arith.constant 0 : i32
    %c0_i32_0 = arith.constant 0 : i32
    %c0_i32_1 = arith.constant 0 : i32
    return %c0_i32, %c0_i32_0 : i32, i32
  }
  func.func @transform_2(%arg0: i32) -> (i32, i32) {
    %c0_i32 = arith.constant 0 : i32
    %c0_i32_0 = arith.constant 0 : i32
    %c0_i32_1 = arith.constant 0 : i32
    return %c0_i32, %c0_i32_0 : i32, i32
  }
  func.func @transform_3(%arg0: i32) -> (i32, i32) {
    %c0_i32 = arith.constant 0 : i32
    %c0_i32_0 = arith.constant 0 : i32
    %c0_i32_1 = arith.constant 0 : i32
    return %c0_i32, %c0_i32_0 : i32, i32
  }
  func.func @transform_4(%arg0: i32) -> (i32, i32) {
    %c0_i32 = arith.constant 0 : i32
    %c0_i32_0 = arith.constant 0 : i32
    %c0_i32_1 = arith.constant 0 : i32
    return %c0_i32, %c0_i32_0 : i32, i32
  }
  func.func @transform_5(%arg0: i32) -> (i32, i32) {
    %c0_i32 = arith.constant 0 : i32
    %c0_i32_0 = arith.constant 0 : i32
    %c0_i32_1 = arith.constant 0 : i32
    return %c0_i32, %c0_i32_0 : i32, i32
  }
  func.func @transform_6(%arg0: i32) -> (i32, i32) {
    %c0_i32 = arith.constant 0 : i32
    %c0_i32_0 = arith.constant 0 : i32
    %c0_i32_1 = arith.constant 0 : i32
    return %c0_i32, %c0_i32_0 : i32, i32
  }
  func.func @transform_7(%arg0: i32) -> (i32, i32) {
    %c0_i32 = arith.constant 0 : i32
    %c0_i32_0 = arith.constant 0 : i32
    return %arg0, %c0_i32 : i32, i32
  }
}

</mosaic_0001>

<bundles_post_ra>
// kernel: tpu_custom_call.1
= control target key start
LH: loop header
LB: loop body
LE: loop exit
PB: predicated region body
PF: predicated region fallthrough
CT: control target
= control target key end

     0   :  { %12 = vsyncpa [#allocation3], 0  ;;  %s738_s0 = inlined_call_operand.vmem [shape: f32[8,20], index: 0, kind: input, shape index: {}]   ;;  %s739_s1 = inlined_call_operand.vmem [shape: f32[15,256], index: 1, kind: input, shape index: {}]   ;;  %s740_s2 = inlined_call_operand.vmem [shape: f32[1,256], index: 2, kind: input, shape index: {}]   ;;  %s741_s3 = inlined_call_operand.hbm [shape: f32[256,128], index: 3, kind: input, shape index: {}]   ;;  %s742_s4 = inlined_call_operand.vmem [shape: f32[1,128], index: 4, kind: input, shape index: {}]   ;;  %s743_s5 = inlined_call_operand.vmem [shape: f32[128,8], index: 5, kind: input, shape index: {}]   ;;  %s744_s6 = inlined_call_operand.vmem [shape: f32[1,8], index: 6, kind: input, shape index: {}]   ;;  %s745_s7 = inlined_call_operand.hbm [shape: f32[8,13], index: 7, kind: output, shape index: {}]  }
   0x1   :  { %13 = vsyncpa [#allocation4], 0  ;;  %s579_s24 = smov [#allocation2]   ;;  %s531_s28 = scalar_lea.hbm %s741_s3, 4096 }
   0x2   :  { %s25_s25 = sshll.u32 %s579_s24, 4  ;;  %p532_p0 = scmp.ne.s32.totalorder %s741_s3, %s531_s28  ;;  %s26_s25 = int_to_ptr.vmem [resolvable:$true] %s25_s25 }
   0x3   :  { %p535_p1 = scmp.lt.u32.totalorder %s531_s28, %s741_s3 }
   0x5   :  { %p537_p2 = pnand %p535_p1, %p532_p0 }
   0x7   :  { %540 = shalt.err (!%p537_p2)
}
   0x8   :  { %s541_s10 = scalar_lea.vmem %s26_s25, 4096  ;;  %p546_p4 = scmp.lt.s32.totalorder %s26_s25, %s26_s25 }
   0x9   :  { %p542_p3 = scmp.ne.s32.totalorder %s26_s25, %s541_s10  ;;  %p547_p5 = scmp.lt.s32.totalorder %s541_s10, %s541_s10 }
   0xb   :  { %p548_p6 = por %p547_p5, %p546_p4 }
   0xd   :  { %p549_p7 = pnand %p548_p6, %p542_p3 }
   0xf   :  { %552 = shalt.err (!%p549_p7)
}
  0x10   :  { %s580_s11 = smov 128   ;;  %s581_s12 = smov 8  }
  0x11   :  { %31 = dma.hbm_to_vmem [thread:$0]  %s741_s3, 4096, %s26_s25, [#allocation3], %s580_s11, %s580_s11, %s581_s12  }
  0x12   :  { %575 = dma.done.wait [#allocation3], 4096  }
  0x13   :  { %576 = vsyncadd [#allocation3], 4294963200  ;;  %v582_v0 = vmov 0.0   ;;  %vm62_vm0 = vcmask 1046528   ;;  %vm583_vm1 = vmmov 1   ;;  %v43_v2 = vld [vmem:[%s739_s1 + $0x8] sm:$0xff] }
  0x14   :  { %133 = vmatprep.mubr.f32.mxu0 %v582_v0  ;;  %vm641_vm2 = vmpackc.low %vm62_vm0, %vm583_vm1  ;;  %v45_v3 = vld [vmem:[%s739_s1 + $0x18] sm:$0x7f]  ;;  %v42_v4 = vld [vmem:[%s739_s1] sm:$0xff]  ;;  %vm58_vm3 = vcmask 121856   ;;  %v584_v60 = vmov 0.0|0.0   ;;  %vm585_vm4 = vmmov 0  }
  0x15   :  { %v460_v5 = vpack.c.bf16 %v45_v3, %v43_v2  ;;  %v44_v6 = vld [vmem:[%s739_s1 + $0x10] sm:$0x7f]  ;;  %v158_v7 = vld [vmem:[#allocation2 + $0x80] sm:$0xff]  ;;  %v159_v10 = vld [vmem:[#allocation2 + $0x88] sm:$0xff]  ;;  %s586_s29 = smov 121   ;;  %s587_s10 = smov [#allocation5]  }
  0x16   :  { %v463_v8 = vpack.c.bf16 %v44_v6, %v42_v4  ;;  %v660_v9 = vld [vmem:[%s738_s0] sm:$0xff]  ;;  %v143_v12 = vld [vmem:[#allocation2 + $0x8] sm:$0xff]  ;;  %v466_v13 = vpack.c.bf16 %v159_v10, %v158_v7  ;;  %v160_v15 = vld [vmem:[#allocation2 + $0x90] sm:$0xff]  ;;  %s359_s11 = sshll.u32 %s587_s10, 4  ;;  %vm349_vm5 = vcmask 64512   ;;  %vm351_vm6 = vcmask 105472   ;;  %s360_s11 = int_to_ptr.vmem [resolvable:$true] %s359_s11 }
  0x17   :  { %v142_v11 = vld [vmem:[#allocation2] sm:$0xff]  ;;  %462 = vmatprep.subr.msk.bf16.mxu0 %vm641_vm2, %v460_v5  ;;  %v161_v16 = vld [vmem:[#allocation2 + $0x98] sm:$0xff]  ;;  %v144_v17 = vld [vmem:[#allocation2 + $0x10] sm:$0xff]  ;;  %346 = vrot.lane.b32.xlu0 %v660_v9, %s586_s29  ;;  %p558_p9 = scmp.lt.s32.totalorder %s360_s11, %s360_s11 }
  0x18   :  { %v468_v14 = vpack.c.bf16 %v143_v12, %v142_v11  ;;  %465 = vmatpush1.bf16.msk.msra.mxu0 %vm641_vm2, %v463_v8  ;;  %v470_v18 = vpack.c.bf16 %v161_v16, %v160_v15  ;;  %v145_v19 = vld [vmem:[#allocation2 + $0x18] sm:$0xff]  ;;  %v162_v20 = vld [vmem:[#allocation2 + $0xa0] sm:$0xff]  ;;  %v163_v21 = vld [vmem:[#allocation2 + $0xa8] sm:$0xff]  ;;  %467 = vmatprep.subr.bf16.mxu1 %v466_v13 }
  0x19   :  { %v472_v22 = vpack.c.bf16 %v145_v19, %v144_v17  ;;  %v474_v23 = vpack.c.bf16 %v163_v21, %v162_v20  ;;  %v146_v24 = vld [vmem:[#allocation2 + $0x20] sm:$0xff]  ;;  %v147_v25 = vld [vmem:[#allocation2 + $0x28] sm:$0xff]  ;;  %v164_v26 = vld [vmem:[#allocation2 + $0xb0] sm:$0xff]  ;;  %498 = vmatprep.subr.bf16.mxu0 %v584_v60 }
  0x1a   :  { %469 = vmatpush3.bf16.msra.mxu1 %v468_v14  ;;  %v165_v27 = vld [vmem:[#allocation2 + $0xb8] sm:$0xff]  ;;  %v476_v28 = vpack.c.bf16 %v147_v25, %v146_v24  ;;  %v148_v30 = vld [vmem:[#allocation2 + $0x30] sm:$0xff]  ;;  %v166_v32 = vld [vmem:[#allocation2 + $0xc0] sm:$0xff]  ;;  %v48_v14 = vlaneseq }
  0x1b   :  { %370 = vmatmul.mubr.msk.f32.vlgmr.msra.gmra.mrb[0].mxu0 %vm58_vm3, %v660_v9  ;;  %471 = vmatprep.subr.bf16.mxu1 %v470_v18  ;;  %v478_v29 = vpack.c.bf16 %v165_v27, %v164_v26  ;;  %v149_v31 = vld [vmem:[#allocation2 + $0x38] sm:$0xff]  ;;  %v167_v33 = vld [vmem:[#allocation2 + $0xc8] sm:$0xff]  ;;  %v150_v36 = vld [vmem:[#allocation2 + $0x40] sm:$0xff] }
  0x1c   :  { %v480_v34 = vpack.c.bf16 %v149_v31, %v148_v30  ;;  %v482_v35 = vpack.c.bf16 %v167_v33, %v166_v32  ;;  %v151_v37 = vld [vmem:[#allocation2 + $0x48] sm:$0xff]  ;;  %v168_v38 = vld [vmem:[#allocation2 + $0xd0] sm:$0xff]  ;;  %v169_v39 = vld [vmem:[#allocation2 + $0xd8] sm:$0xff]  ;;  %v49_v15 = vshrl.u32 %v48_v14, 7  ;;  %457 = vmatprep.mubr.msk.f32.mxu0 %vm585_vm4, %v582_v0 }
  0x1d   :  { %v484_v40 = vpack.c.bf16 %v151_v37, %v150_v36  ;;  %v486_v41 = vpack.c.bf16 %v169_v39, %v168_v38  ;;  %v152_v42 = vld [vmem:[#allocation2 + $0x50] sm:$0xff]  ;;  %v153_v43 = vld [vmem:[#allocation2 + $0x58] sm:$0xff]  ;;  %v170_v44 = vld [vmem:[#allocation2 + $0xe0] sm:$0xff] }
  0x1e   :  { %473 = vmatpush3.bf16.msra.mxu1 %v472_v22  ;;  %v171_v45 = vld [vmem:[#allocation2 + $0xe8] sm:$0xff]  ;;  %v488_v46 = vpack.c.bf16 %v153_v43, %v152_v42  ;;  %v154_v48 = vld [vmem:[#allocation2 + $0x60] sm:$0xff]  ;;  %v172_v51 = vld [vmem:[#allocation2 + $0xf0] sm:$0xff]  ;;  %v50_v16 = vsub.s32 0, %v49_v15  ;;  %v54_v18 = vsub.s32 1, %v49_v15 }
  0x1f   :  { %475 = vmatprep.subr.bf16.mxu1 %v474_v23  ;;  %v490_v47 = vpack.c.bf16 %v171_v45, %v170_v44  ;;  %v155_v49 = vld [vmem:[#allocation2 + $0x68] sm:$0xff]  ;;  %v173_v52 = vld [vmem:[#allocation2 + $0xf8] sm:$0xff]  ;;  %v156_v54 = vld [vmem:[#allocation2 + $0x70] sm:$0xff] }
  0x20   :  { %v492_v50 = vpack.c.bf16 %v155_v49, %v154_v48  ;;  %v494_v53 = vpack.c.bf16 %v173_v52, %v172_v51  ;;  %v157_v55 = vld [vmem:[#allocation2 + $0x78] sm:$0xff]  ;;  %v252_v57 = vld [vmem:[%s743_s5] sm:$0xff]  ;;  %v253_v58 = vld [vmem:[%s743_s5 + $0x8] sm:$0xff] }
  0x21   :  { %v496_v56 = vpack.c.bf16 %v157_v55, %v156_v54  ;;  %v254_v59 = vld [vmem:[%s743_s5 + $0x10] sm:$0xff]  ;;  %v499_v61 = vpack.c.bf16 %v253_v58, %v252_v57  ;;  %v255_v62 = vld [vmem:[%s743_s5 + $0x18] sm:$0xff]  ;;  %v256_v1 = vld [vmem:[%s743_s5 + $0x20] sm:$0xff] }
  0x22   :  { %477 = vmatpush3.bf16.msra.mxu1 %v476_v28  ;;  %v502_v63 = vpack.c.bf16 %v255_v62, %v254_v59  ;;  %v257_v2 = vld [vmem:[%s743_s5 + $0x28] sm:$0xff]  ;;  %v258_v4 = vld [vmem:[%s743_s5 + $0x30] sm:$0xff]  ;;  %v259_v5 = vld [vmem:[%s743_s5 + $0x38] sm:$0xff] }
  0x23   :  { %479 = vmatprep.subr.bf16.mxu1 %v478_v29  ;;  %500 = vmatpush3.bf16.msra.mxu0 %v499_v61  ;;  %v505_v3 = vpack.c.bf16 %v257_v2, %v256_v1  ;;  %v508_v6 = vpack.c.bf16 %v259_v5, %v258_v4  ;;  %v260_v7 = vld [vmem:[%s743_s5 + $0x40] sm:$0xff]  ;;  %v261_v8 = vld [vmem:[%s743_s5 + $0x48] sm:$0xff]  ;;  %v262_v11 = vld [vmem:[%s743_s5 + $0x50] sm:$0xff] }
  0x24   :  { %501 = vmatprep.subr.bf16.mxu0 %v584_v60  ;;  %v511_v10 = vpack.c.bf16 %v261_v8, %v260_v7  ;;  %v263_v12 = vld [vmem:[%s743_s5 + $0x58] sm:$0xff]  ;;  %v46_v17 = vld [vmem:[%s740_s2] sm:$0x3]  ;;  %v265_v28 = vld [vmem:[%s743_s5 + $0x68] sm:$0xff] }
  0x25   :  { %v514_v13 = vpack.c.bf16 %v263_v12, %v262_v11  ;;  %v51_v19 = vrot.slane %v46_v17, %v50_v16  ;;  %v55_v20 = vrot.slane %v46_v17, %v54_v18  ;;  %v264_v27 = vld [vmem:[%s743_s5 + $0x60] sm:$0xff]  ;;  %v266_v30 = vld [vmem:[%s743_s5 + $0x70] sm:$0xff]  ;;  %v267_v31 = vld [vmem:[%s743_s5 + $0x78] sm:$0xff] }
  0x26   :  { %481 = vmatpush3.bf16.msra.mxu1 %v480_v34  ;;  %v517_v29 = vpack.c.bf16 %v265_v28, %v264_v27  ;;  %v520_v32 = vpack.c.bf16 %v267_v31, %v266_v30  ;;  %v371_v34 = vld [vmem:[%s742_s4] ss:$0 sm:$0xff]  ;;  %s553_s4 = scalar_lea.vmem %s360_s11, 128 }
  0x27   :  { %483 = vmatprep.subr.bf16.mxu1 %v482_v35  ;;  %503 = vmatpush3.bf16.msra.mxu0 %v502_v63  ;;  %v372_v39 = vld [vmem:[%s744_s6] ss:$0 sm:$0xff]  ;;  %p554_p8 = scmp.ne.s32.totalorder %s360_s11, %s553_s4  ;;  %p559_p10 = scmp.lt.s32.totalorder %s553_s4, %s553_s4 }
  0x28   :  { %504 = vmatprep.subr.bf16.mxu0 %v584_v60 }
  0x29   :  { %p560_p11 = por %p559_p10, %p558_p9 }
  0x2a   :  { %485 = vmatpush3.bf16.msra.mxu1 %v484_v40 }
  0x2b   :  { %487 = vmatprep.subr.bf16.mxu1 %v486_v41  ;;  %506 = vmatpush3.bf16.msra.mxu0 %v505_v3  ;;  %p561_p12 = pnand %p560_p11, %p554_p8 }
  0x2c   :  { %507 = vmatprep.subr.bf16.mxu0 %v584_v60 }
  0x2e   :  { %489 = vmatpush3.bf16.msra.mxu1 %v488_v46 }
  0x2f   :  { %491 = vmatprep.subr.bf16.mxu1 %v490_v47  ;;  %509 = vmatpush3.bf16.msra.mxu0 %v508_v6 }
  0x30   :  { %510 = vmatprep.subr.bf16.mxu0 %v584_v60 }
  0x32   :  { %493 = vmatpush3.bf16.msra.mxu1 %v492_v50 }
  0x33   :  { %495 = vmatprep.subr.bf16.mxu1 %v494_v53  ;;  %512 = vmatpush3.bf16.msra.mxu0 %v511_v10 }
  0x34   :  { %513 = vmatprep.subr.bf16.mxu0 %v584_v60 }
  0x36   :  { %497 = vmatpush3.bf16.msra.mxu1 %v496_v56 }
  0x37   :  { %515 = vmatpush3.bf16.msra.mxu0 %v514_v13 }
  0x38   :  { %516 = vmatprep.subr.bf16.mxu0 %v584_v60 }
  0x3b   :  { %518 = vmatpush3.bf16.msra.mxu0 %v517_v29 }
  0x3c   :  { %519 = vmatprep.subr.bf16.mxu0 %v584_v60 }
  0x3f   :  { %521 = vmatpush3.bf16.msra.mxu0 %v520_v32 }
  0x89   :  { %v347_v9 = vpop.permute.xlu0 %346 }
  0xee   :  { %v135_v21 = vpop.f32.mrb[0].mxu0 }
  0xef   :  { %v136_v22 = vadd.f32 %v135_v21, %v51_v19  ;;  %v137_v23 = vpop.f32.mrb[1].mxu0 }
  0xf0   :  { %v138_v24 = vadd.f32 %v137_v23, %v55_v20 }
  0xf1   :  { %v140_v26 = vmax.f32 %v136_v22, 0.0 }
  0xf2   :  { %v141_v25 = vmax.f32 %v138_v24, 0.0 }
  0xf4   :  { %245 = vmatprep.mubr.f32.mxu1 %v141_v25 }
  0xf5   :  { %246 = vmatmul.mubr.f32.vlgmr.msra.gmra.mrb[0].mxu1 %v140_v26 }
 0x1c8   :  { %v405_v33 = vpop.f32.mrb[0].mxu1 }
 0x1c9   :  { %v406_v35 = vpop.f32.mrb[1].mxu1 }
 0x1ca   :  { %v407_v36 = vadd.f32 %v406_v35, %v405_v33 }
 0x1cc   :  { %v248_v37 = vadd.f32 %v407_v36, %v371_v34 }
 0x1ce   :  { %v251_v38 = vmax.f32 %v248_v37, 0.0 }
 0x1d0   :  { %458 = vmatmul.mubr.f32.vlgmr.msra.gmra.mrb[2].mxu0 %v251_v38 }
 0x2a3   :  { %v341_v40 = vpop.f32.mrb[2].mxu0 }
 0x2a4   :  { %v342_v41 = vadd.f32 %v372_v39, %v341_v40  ;;  %v459_v0 = vpop.f32.mrb[3].mxu0 }
 0x2a6   :  { %v345_v42 = vmax.f32 %v342_v41, 0.0 }
 0x2a8   :  { %v350_v43 = vsel %vm349_vm5, %v345_v42, %v347_v9 }
 0x2a9   :  { %352 = vst.msk [vmem:[#allocation5] sm:$0xff] %vm351_vm6, %v350_v43 }
 0x2aa   :  { %564 = shalt.err (!%p561_p12)
}
 0x2ab   :  { %s565_s13 = scalar_lea.hbm %s745_s7, 128 }
 0x2ac   :  { %p566_p13 = scmp.ne.s32.totalorder %s745_s7, %s565_s13  ;;  %p569_p0 = scmp.lt.u32.totalorder %s565_s13, %s745_s7 }
 0x2ae   :  { %p571_p1 = pnand %p569_p0, %p566_p13 }
 0x2b0   :  { %574 = shalt.err (!%p571_p1)
}
 0x2b1   :  { %362 = dma.vmem_to_hbm [thread:$0]  %s360_s11, 128, %s745_s7, [#allocation4]  }
 0x2b2   :  { %577 = dma.done.wait [#allocation4], 128  }
 0x2b3   :  { %578 = vsyncadd [#allocation4], 4294967168 }
 0x2b4   :  { %366 = vsyncpa [#allocation3], 1 }
 0x2b5   :  { %367 = vsyncpa [#allocation4], 1 }

</bundles_post_ra>
